<compile_context>
chip_gen: v7x
topology: tpu7x:2x2x1
jax: 0.10.0
libtpu: 0.0.40
codegen_flags: <defaults>
</compile_context>

<pallas_src>
import functools

import jax
import jax.numpy as jnp
from jax.experimental import pallas as pl
from jax.experimental.pallas import tpu as pltpu

THRESHOLD = 0.0  # scalar threshold returned by the forward pass


def _pick_tile(dim, max_tile=512, align=128):
    """Largest 128-aligned tile <= max_tile dividing dim, else the full dim."""
    if dim <= max_tile:
        return dim
    for t in range(max_tile, align - 1, -align):
        if dim % t == 0:
            return t
    return dim  # ragged: fall back to a single full-dim block


def _ternbin_kernel(x_ref, w_ref, b_ref, xout_ref, z_ref, acc_ref, *, threshold):
    # Grid = (N tiles, K tiles); K (reduction) is the last axis.
    # All grid queries stay at the top level of the kernel body.
    k = pl.program_id(1)
    is_first = k == 0
    is_last = k == pl.num_programs(1) - 1

    @pl.when(is_first)
    def _():
        acc_ref[...] = jnp.zeros_like(acc_ref)

    # (B, tk) f32 @ (tk, tn) bf16->f32 ; ternary W is exact in bf16 so the
    # upcast reproduces the f32 weights bit-for-bit.
    acc_ref[...] += jnp.dot(
        x_ref[...],
        w_ref[...].astype(jnp.float32),
        preferred_element_type=jnp.float32,
    )

    @pl.when(is_last)
    def _():
        z = acc_ref[...] + b_ref[...]  # bias tile already matches this N block
        z_ref[...] = z
        xout_ref[...] = (z >= threshold).astype(jnp.float32)


def ternbin_forward(x, W, b, *, tn=None, tk=None, threshold=THRESHOLD):
    """Returns (x_out, z, threshold) exactly like TernBinLayer.forward."""
    B, input_dim = x.shape
    _, output_dim = W.shape

    tn = _pick_tile(output_dim) if tn is None else tn
    tk = _pick_tile(input_dim) if tk is None else tk
    assert output_dim % tn == 0 and input_dim % tk == 0

    # Stream W as bf16 (lossless for ternary {-1,0,+1}); x stays f32 so z is exact.
    W_bf16 = W.astype(jnp.bfloat16)
    b2d = b.reshape(1, output_dim).astype(jnp.float32)

    grid = (output_dim // tn, input_dim // tk)  # K reduction axis last
    kernel = functools.partial(_ternbin_kernel, threshold=threshold)

    x_out, z = pl.pallas_call(
        kernel,
        out_shape=(
            jax.ShapeDtypeStruct((B, output_dim), jnp.float32),  # binarized x
            jax.ShapeDtypeStruct((B, output_dim), jnp.float32),  # pre-activation z
        ),
        grid_spec=pltpu.PrefetchScalarGridSpec(
            num_scalar_prefetch=0,
            grid=grid,
            in_specs=[
                pl.BlockSpec((B, tk), lambda j, k: (0, k)),    # x K-stripe
                pl.BlockSpec((tk, tn), lambda j, k: (k, j)),   # W tile (bf16)
                pl.BlockSpec((1, tn), lambda j, k: (0, j)),    # bias tile (per N block)
            ],
            out_specs=[
                pl.BlockSpec((B, tn), lambda j, k: (0, j)),
                pl.BlockSpec((B, tn), lambda j, k: (0, j)),
            ],
            scratch_shapes=[pltpu.VMEM((B, tn), jnp.float32)],  # f32 accumulator
        ),
        compiler_params=pltpu.CompilerParams(
            dimension_semantics=("parallel", "arbitrary"),
        ),
    )(x, W_bf16, b2d)
    return x_out, z, threshold


def init_params(key, input_dim, output_dim):
    """Deterministic init matching _initialise_W_and_b defaults."""
    u = jax.random.uniform(key, (input_dim, output_dim))
    # P(-1)=0.25, P(+1)=0.25, P(0)=0.5  -> mean 0, zero_prob 0.5
    W = jnp.where(u < 0.25, -1.0, jnp.where(u < 0.5, 1.0, 0.0)).astype(jnp.float32)
    b = jnp.full((output_dim,), 128.0, dtype=jnp.float32)
    return W, b


if __name__ == "__main__":
    key = jax.random.PRNGKey(0)
    k_x, k_w = jax.random.split(key)

    # Exercises both the N grid (1024/512 = 2 tiles -> both v7x TCs) and the
    # K accumulator (1024/512 = 2 reduction steps).
    batch, input_dim, output_dim = 8, 1024, 1024
    x = jax.random.normal(k_x, (batch, input_dim), dtype=jnp.float32)
    W, b = init_params(k_w, input_dim, output_dim)

    x_out, z, threshold = ternbin_forward(x, W, b)
    jax.block_until_ready((x_out, z))

    # reference check in plain JAX
    z_ref = x @ W + b[None, :]
    x_ref = (z_ref >= threshold).astype(jnp.float32)
    assert jnp.allclose(z, z_ref, atol=5e-3, rtol=1e-4)
    assert jnp.array_equal(x_out, x_ref)
    assert x_out.shape == (batch, output_dim) and z.shape == (batch, output_dim)

    print("KERNEL_OK")
</pallas_src>

<mosaic_0001>
module attributes {stable_mosaic.version = 11 : i64} {
  func.func @_ternbin_kernel(%arg0: i32, %arg1: i32, %arg2: memref<8x512xf32, #tpu.memory_space<vmem>>, %arg3: memref<512x512xbf16, #tpu.memory_space<vmem>>, %arg4: memref<1x512xf32, #tpu.memory_space<vmem>>, %arg5: memref<8x512xf32, #tpu.memory_space<vmem>>, %arg6: memref<8x512xf32, #tpu.memory_space<vmem>>, %arg7: memref<8x512xf32, #tpu.memory_space<vmem>>) attributes {dimension_semantics = [#tpu.dimension_semantics<parallel>, #tpu.dimension_semantics<arbitrary>], iteration_bounds = array<i64: 2, 2>, scalar_prefetch = 0 : i64, scratch_operands = 1 : i64, tpu.core_type = #tpu.core_type<tc>, window_params = [{transform_indices = @transform_0, window_bounds = array<i64: 8, 512>}, {transform_indices = @transform_1, window_bounds = array<i64: 512, 512>}, {transform_indices = @transform_2, window_bounds = array<i64: 1, 512>}, {transform_indices = @transform_3, window_bounds = array<i64: 8, 512>}, {transform_indices = @transform_4, window_bounds = array<i64: 8, 512>}]} {
    %c0_i32 = arith.constant 0 : i32
    %0 = arith.cmpi eq, %arg1, %c0_i32 : i32
    %c1_i32 = arith.constant 1 : i32
    %1 = arith.cmpi eq, %arg1, %c1_i32 : i32
    %2 = arith.extui %0 : i1 to i32
    %c0_i32_0 = arith.constant 0 : i32
    %3 = arith.cmpi ne, %2, %c0_i32_0 : i32
    scf.if %3 {
      %cst_9 = arith.constant 0.000000e+00 : f32
      %13 = vector.broadcast %cst_9 : f32 to vector<8x512xf32>
      %c0_10 = arith.constant 0 : index
      %c0_11 = arith.constant 0 : index
      %14 = vector.load %arg7[%c0_10, %c0_11] : memref<8x512xf32, #tpu.memory_space<vmem>>, vector<8x512xf32>
      tpu.vector_store %arg7[%c0_10, %c0_11], %13 {strides = array<i32>} : memref<8x512xf32, #tpu.memory_space<vmem>>, vector<8x512xf32>,
    } else {
    }
    %c0 = arith.constant 0 : index
    %c0_1 = arith.constant 0 : index
    %4 = vector.load %arg7[%c0, %c0_1] : memref<8x512xf32, #tpu.memory_space<vmem>>, vector<8x512xf32>
    %c0_2 = arith.constant 0 : index
    %c0_3 = arith.constant 0 : index
    %5 = vector.load %arg2[%c0_2, %c0_3] : memref<8x512xf32, #tpu.memory_space<vmem>>, vector<8x512xf32>
    %c0_4 = arith.constant 0 : index
    %c0_5 = arith.constant 0 : index
    %6 = vector.load %arg3[%c0_4, %c0_5] : memref<512x512xbf16, #tpu.memory_space<vmem>>, vector<512x512xbf16>
    %7 = arith.extf %6 : vector<512x512xbf16> to vector<512x512xf32>
    %cst = arith.constant dense<0.000000e+00> : vector<8x512xf32>
    %8 = tpu.matmul %5, %7, %cst {dimension_numbers = #tpu.dot_dimension_numbers<[1], [0], [0], [1], [0, 0, 1, 1], [], []>} : vector<8x512xf32>, vector<512x512xf32>, vector<8x512xf32> -> vector<8x512xf32>
    %9 = arith.addf %4, %8 : vector<8x512xf32>
    %c0_6 = arith.constant 0 : index
    %c0_7 = arith.constant 0 : index
    %10 = vector.load %arg7[%c0_6, %c0_7] : memref<8x512xf32, #tpu.memory_space<vmem>>, vector<8x512xf32>
    tpu.vector_store %arg7[%c0_6, %c0_7], %9 {strides = array<i32>} : memref<8x512xf32, #tpu.memory_space<vmem>>, vector<8x512xf32>,
    %11 = arith.extui %1 : i1 to i32
    %c0_i32_8 = arith.constant 0 : i32
    %12 = arith.cmpi ne, %11, %c0_i32_8 : i32
    scf.if %12 {
      %c0_9 = arith.constant 0 : index
      %c0_10 = arith.constant 0 : index
      %13 = vector.load %arg7[%c0_9, %c0_10] : memref<8x512xf32, #tpu.memory_space<vmem>>, vector<8x512xf32>
      %c0_11 = arith.constant 0 : index
      %c0_12 = arith.constant 0 : index
      %14 = vector.load %arg4[%c0_11, %c0_12] : memref<1x512xf32, #tpu.memory_space<vmem>>, vector<1x512xf32>
      %15 = vector.broadcast %14 : vector<1x512xf32> to vector<8x512xf32>
      %16 = arith.addf %13, %15 : vector<8x512xf32>
      %c0_13 = arith.constant 0 : index
      %c0_14 = arith.constant 0 : index
      %17 = vector.load %arg6[%c0_13, %c0_14] : memref<8x512xf32, #tpu.memory_space<vmem>>, vector<8x512xf32>
      tpu.vector_store %arg6[%c0_13, %c0_14], %16 {strides = array<i32>} : memref<8x512xf32, #tpu.memory_space<vmem>>, vector<8x512xf32>,
      %cst_15 = arith.constant 0.000000e+00 : f32
      %18 = vector.broadcast %cst_15 : f32 to vector<8x512xf32>
      %19 = arith.cmpf oge, %16, %18 : vector<8x512xf32>
      %20 = arith.extui %19 : vector<8x512xi1> to vector<8x512xi32>
      %21 = arith.sitofp %20 : vector<8x512xi32> to vector<8x512xf32>
      %c0_16 = arith.constant 0 : index
      %c0_17 = arith.constant 0 : index
      %22 = vector.load %arg5[%c0_16, %c0_17] : memref<8x512xf32, #tpu.memory_space<vmem>>, vector<8x512xf32>
      tpu.vector_store %arg5[%c0_16, %c0_17], %21 {strides = array<i32>} : memref<8x512xf32, #tpu.memory_space<vmem>>, vector<8x512xf32>,
    } else {
    }
    return
  }
  func.func @transform_0(%arg0: i32, %arg1: i32) -> (i32, i32) {
    %c0_i32 = arith.constant 0 : i32
    %c0_i32_0 = arith.constant 0 : i32
    return %c0_i32, %arg1 : i32, i32
  }
  func.func @transform_1(%arg0: i32, %arg1: i32) -> (i32, i32) {
    %c0_i32 = arith.constant 0 : i32
    return %arg1, %arg0 : i32, i32
  }
  func.func @transform_2(%arg0: i32, %arg1: i32) -> (i32, i32) {
    %c0_i32 = arith.constant 0 : i32
    %c0_i32_0 = arith.constant 0 : i32
    return %c0_i32, %arg0 : i32, i32
  }
  func.func @transform_3(%arg0: i32, %arg1: i32) -> (i32, i32) {
    %c0_i32 = arith.constant 0 : i32
    %c0_i32_0 = arith.constant 0 : i32
    return %c0_i32, %arg0 : i32, i32
  }
  func.func @transform_4(%arg0: i32, %arg1: i32) -> (i32, i32) {
    %c0_i32 = arith.constant 0 : i32
    %c0_i32_0 = arith.constant 0 : i32
    return %c0_i32, %arg0 : i32, i32
  }
}

</mosaic_0001>

<bundles_post_ra>
// kernel: tpu_custom_call.1
= control target key start
LH: loop header
LB: loop body
LE: loop exit
PB: predicated region body
PF: predicated region fallthrough
CT: control target
= control target key end

     0   :  { %s2912_s0 = inlined_call_operand.hbm [shape: f32[8,1024], index: 0, kind: input, shape index: {}]   ;;  %s2913_s1 = inlined_call_operand.hbm [shape: bf16[1024,1024], index: 1, kind: input, shape index: {}]   ;;  %s2914_s2 = inlined_call_operand.hbm [shape: f32[1,1024], index: 2, kind: input, shape index: {}]   ;;  %s2915_s3 = inlined_call_operand.hbm [shape: f32[8,1024], index: 3, kind: output, shape index: {0}]   ;;  %s2916_s4 = inlined_call_operand.hbm [shape: f32[8,1024], index: 4, kind: output, shape index: {1}]  }
   0x1   :  { %2933 = sst [smem:[#allocation23_spill]] %s2912_s0 }
   0x2   :  { %2934 = sst [smem:[#allocation24_spill]] %s2913_s1 }
   0x3   :  { %2935 = sst [smem:[#allocation25_spill]] %s2914_s2 }
   0x4   :  { %2936 = sst [smem:[#allocation26_spill]] %s2915_s3 }
   0x5   :  { %2937 = sst [smem:[#allocation27_spill]] %s2916_s4 }
   0x6   :  { %10 = vsyncpa [#allocation4], 0 }
   0x7   :  { %12 = vsyncpa [#allocation4 + $0x1], 0 }
   0x8   :  { %13 = vsyncpa [#allocation7], 0 }
   0x9   :  { %15 = vsyncpa [#allocation7 + $0x1], 0 }
   0xa   :  { %16 = vsyncpa [#allocation5], 0 }
   0xb   :  { %18 = vsyncpa [#allocation5 + $0x1], 0 }
   0xc   :  { %19 = vsyncpa [#allocation11], 0 }
   0xd   :  { %21 = vsyncpa [#allocation11 + $0x1], 0  ;;  %s2341_s15 = smov 0   ;;  %s2343_s16 = smov 0  }
   0xe   :  { %s2345_s17 = smov 0   ;;  %s2347_s18 = smov 0  }
   0xf   :  { %s2349_s19 = smov 0   ;;  %s2351_s20 = smov 0  }
  0x10   :  { %s2353_s21 = smov 0   ;;  %s2355_s22 = smov 0  }
  0x11   :  { %s2357_s23 = smov 0   ;;  %s2359_s24 = smov 0  }
  0x12   :  { %s2361_s25 = smov 0   ;;  %s2363_s26 = smov 0  }
  0x13   :  { %s2365_s27 = smov 0   ;;  %s2367_s28 = smov 0  }
  0x14 LB: > { %2938 = sst [smem:[#allocation17_spill]] %s2252_s15  ;;  %s36_s29 = sadd.s32 1, %s2296_s26  ;;  %s2304_s28 = sphi %s2367_s28, %s27_s28   ;;  %s2300_s27 = sphi %s2365_s27, %s2980_s27   ;;  %s2296_s26 = sphi %s2363_s26, %s2991_s26   ;;  %s2292_s25 = sphi %s2361_s25, %s2978_s25   ;;  %s2288_s24 = sphi %s2359_s24, %s2990_s24   ;;  %s2284_s23 = sphi %s2357_s23, %s2989_s23   ;;  %s2280_s22 = sphi %s2355_s22, %s2988_s22   ;;  %s2276_s21 = sphi %s2353_s21, %s2987_s21   ;;  %s2272_s20 = sphi %s2351_s20, %s2986_s20   ;;  %s2268_s19 = sphi %s2349_s19, %s2985_s19   ;;  %s2264_s18 = sphi %s2347_s18, %s2984_s18   ;;  %s2260_s17 = sphi %s2345_s17, %s2983_s17   ;;  %s2256_s16 = sphi %s2343_s16, %s2982_s16   ;;  %s2252_s15 = sphi %s2341_s15, %s2981_s15  }
  0x15   : > { %2939 = sst [smem:[#allocation18_spill]] %s2288_s24  ;;  %s39_s30 = sadd.s32 1, %s2300_s27 }
  0x16   : > { %2940 = sst [smem:[#allocation19_spill]] %s2292_s25  ;;  %p37_p0 = scmp.ge.s32.totalorder %s36_s29, 2 }
  0x17   : > { %2941 = sst [smem:[#allocation20_spill]] %s2300_s27  ;;  %p2925_p1 = scmp.eq.s32.totalorder %s2304_s28, 0 }
  0x18   : > { %s74_s5 = sadd.s32 1, %s2272_s20  ;;  %p81_p2 = scmp.ne.s32.totalorder %s2272_s20, %s2268_s19 }
  0x19   : > { %s2993_s29 = smov (%p37_p0, %s36_s29), 0  ;;  %s2995_s30 = smov (!%p37_p0, %s39_s30), %s2300_s27 }
  0x1a   : > { %2942 = sst [smem:[#allocation21_spill]] %s2993_s29  ;;  %s2422_s6 = ssub.s32 %s2296_s26, %s2993_s29 }
  0x1b   : > { %p2426_p3 = por %p81_p2, %p2925_p1  ;;  %p41_p4 = scmp.ge.s32.totalorder %s2995_s30, 2 }
  0x1c   : > { %p2923_p6 = scmp.lt.s32.totalorder %s2304_s28, 4  ;;  %s1297_s8 = sshll.u32 %s2296_s26, 9 }
  0x1d   : > { %s2997_s30 = smov (%p41_p4, %s2995_s30), 0  ;;  %s208_s9 = sand.u32 1, %s2304_s28  }
  0x1e   : > { %2944 = sst [smem:[#allocation22_spill]] %s2997_s30  ;;  %s2439_s10 = ssub.s32 %s2300_s27, %s2997_s30 }
  0x1f   : > { %s71_s11 = sor.u32 %s2439_s10, %s2422_s6  ;;  %s210_s12 = sand.u32 1, %s2272_s20  }
  0x20   : > { %p72_p7 = scmp.eq.s32.totalorder %s71_s11, 0  ;;  %s1269_s13 = sshll.u32 %s210_s12, 10 }
  0x21   : > { %s1271_s14 = sshll.u32 %s2300_s27, 2  ;;  %s212_s3 = scalar_lea.vmem [#allocation6], %s1269_s13 }
  0x22   : > { %s2446_s29 = scalar_select %p72_p7, %s2272_s20, %s74_s5  }
  0x23   : > { %s219_s4 = sadd.s32 %s1297_s8, %s1271_s14  ;;  %s222_s25 = sshll.u32 %s212_s3, 4  ;;  %s2450_s25 = int_to_ptr.vmem [resolvable:$true] %s222_s25 }
  0x24   : > { %s1273_s24 = sshll.u32 %s219_s4, 6  ;;  %s2945_s1 = sld [smem:[#allocation24_spill]] }
  0x25   : > { %p2461_p8 = pnand %p2923_p6, %p2426_p3  ;;  %s2465_s3 = scalar_lea.sflag [#allocation7], %s208_s9 }
  0x27   : > { %p2030_p10 = pneg %p2461_p8 }
  0x2a   : > { %s2455_s30 = scalar_lea.hbm %s2945_s1, %s1273_s24  ;;  %s2033_s24 = scalar_lea.hbm %s2945_s1, 65536 }
  0x2b   : > { %s2028_s4 = scalar_lea.hbm %s2455_s30, 16384  ;;  %p2034_p13 = scmp.lt.u32.totalorder %s2455_s30, %s2945_s1 }
  0x2c   : > { %p2029_p9 = scmp.ne.s32.totalorder %s2455_s30, %s2028_s4  ;;  %p2035_p0 = scmp.lt.u32.totalorder %s2033_s24, %s2028_s4 }
  0x2d   : > { %p2037_p3 = scmp.lt.u32.totalorder %s2028_s4, %s2455_s30 }
  0x2e   : > { %p2031_p11 = pnand %p2030_p10, %p2029_p9  ;;  %p2036_p2 = por %p2035_p0, %p2034_p13 }
  0x30   : > { %p2032_p12 = pneg %p2031_p11  ;;  %p2038_p4 = por %p2037_p3, %p2036_p2 }
  0x32   : > { %p2039_p7 = pnand %p2038_p4, %p2032_p12 }
  0x34   : > { %2042 = shalt.err (!%p2039_p7)
}
  0x35   : > { %s2043_s9 = scalar_lea.vmem %s2450_s25, 16384  ;;  %s2306_s12 = smov [#allocation6]  }
  0x36   : > { %p2044_p9 = scmp.ne.s32.totalorder %s2450_s25, %s2043_s9  ;;  %s2048_s13 = sshll.u32 %s2306_s12, 4  ;;  %s2049_s13 = int_to_ptr.vmem [resolvable:$false] %s2048_s13 }
  0x37   : > { %s2050_s14 = scalar_lea.vmem %s2049_s13, 32768  ;;  %p2051_p5 = scmp.lt.s32.totalorder %s2450_s25, %s2049_s13 }
  0x38   : > { %p2046_p11 = pnand %p2044_p9, %p2030_p10  ;;  %p2052_p13 = scmp.lt.s32.totalorder %s2050_s14, %s2043_s9 }
  0x3a   : > { %p2047_p6 = pneg %p2046_p11  ;;  %p2053_p0 = por %p2052_p13, %p2051_p5 }
  0x3c   : > { %p2054_p2 = pnand %p2053_p0, %p2047_p6 }
  0x3e   : > { %2057 = shalt.err (!%p2054_p2)
}
  0x3f   : > { %s2307_s4 = smov 512   ;;  %s2308_s2 = smov 256  }
  0x40   : > { %s2309_s15 = smov 16   ;;  %p1277_p5 = scmp.ge.s32.totalorder %s2304_s28, 1 }
  0x41   : > { %1706 = dma.hbm_to_vmem [thread:$0]  (!%p2461_p8), %s2455_s30, 16384, %s2450_s25, %s2465_s3, %s2307_s4, %s2308_s2, %s2309_s15  }
  0x42   : > { %p249_p6 = scmp.lt.s32.totalorder %s2304_s28, 5  ;;  %s2500_s7 = sadd.s32 4294967295, %s2304_s28  }
  0x43   : > { %p44_p12 = scmp.eq.s32.totalorder %s2422_s6, 0  ;;  %s46_s11 = sadd.s32 1, %s2284_s23 }
  0x44   : > { %p2495_p10 = pnand %p1277_p5, %p249_p6  ;;  %p53_p3 = scmp.ne.s32.totalorder %s2284_s23, %s2280_s22 }
  0x45   : > { %p59_p4 = scmp.ne.s32.totalorder %s2280_s22, %s2276_s21  ;;  %p2924_p7 = scmp.eq.s32.totalorder %s2500_s7, 0 }
  0x46   : > { %s2947_s24 = scalar_select %p2495_p10, 1, 0 }
  0x47   : > { %s2509_s5 = scalar_select %p44_p12, %s2284_s23, %s46_s11  }
  0x48   : > { %p55_p8 = por %p2925_p1, %p53_p3  ;;  %s189_s25 = sand.u32 1, %s2284_s23  }
  0x49   : > { %s2948_s0 = sld [smem:[#allocation23_spill]]  ;;  %p2524_p9 = por %p2924_p7, %p59_p4 }
  0x4a   : > { %p2950_p11 = scmp.ne.s32.totalorder %s2268_s19, %s2264_s18  ;;  %s1266_s13 = sshll.u32 %s189_s25, 5 }
  0x4b   : > { %s2949_s6 = scalar_select %p2524_p9, 1, 0 }
  0x4c   : > { %p2533_p13 = por %p2950_p11, %p2924_p7  ;;  %p2952_p0 = scmp.lt.s32.totalorder %s2304_s28, 4 }
  0x4d   : > { %s193_s14 = scalar_lea.vmem [#allocation3], %s1266_s13  ;;  %s190_s2 = scalar_lea.sflag [#allocation4], %s189_s25 }
  0x4e   : > { %s2951_s21 = scalar_select %p2533_p13, 1, 0 }
  0x4f   : > { %s2520_s12 = scalar_lea.hbm %s2948_s0, %s1297_s8  ;;  %p2539_p2 = pnand %p2952_p0, %p55_p8 }
  0x50   : > { %s201_s4 = sshll.u32 %s193_s14, 4  ;;  %s2058_s15 = scalar_lea.hbm %s2520_s12, 512  ;;  %s2543_s4 = int_to_ptr.vmem [resolvable:$true] %s201_s4 }
  0x51   : > { %p2059_p5 = scmp.ne.s32.totalorder %s2520_s12, %s2058_s15  ;;  %p2060_p6 = pneg %p2539_p2 }
  0x52   : > { %s2063_s30 = scalar_lea.hbm %s2948_s0, 1024  ;;  %p2064_p4 = scmp.lt.u32.totalorder %s2520_s12, %s2948_s0 }
  0x53   : > { %p2061_p12 = pnand %p2060_p6, %p2059_p5  ;;  %p2065_p8 = scmp.lt.u32.totalorder %s2063_s30, %s2058_s15 }
  0x54   : > { %p2067_p0 = scmp.lt.u32.totalorder %s2058_s15, %s2520_s12 }
  0x55   : > { %p2062_p3 = pneg %p2061_p12  ;;  %p2066_p11 = por %p2065_p8, %p2064_p4 }
  0x57   : > { %p2068_p7 = por %p2067_p0, %p2066_p11 }
  0x59   : > { %p2069_p1 = pnand %p2068_p7, %p2062_p3 }
  0x5b   : > { %2072 = shalt.err (!%p2069_p1)
}
  0x5c   : > { %s2073_s25 = scalar_lea.vmem %s2543_s4, 512  ;;  %s2310_s13 = smov [#allocation3]  }
  0x5d   : > { %p2074_p5 = scmp.ne.s32.totalorder %s2543_s4, %s2073_s25  ;;  %s2078_s14 = sshll.u32 %s2310_s13, 4  ;;  %s2079_s14 = int_to_ptr.vmem [resolvable:$false] %s2078_s14 }
  0x5e   : > { %s2080_s1 = scalar_lea.vmem %s2079_s14, 1024  ;;  %p2081_p9 = scmp.lt.s32.totalorder %s2543_s4, %s2079_s14 }
  0x5f   : > { %p2076_p12 = pnand %p2074_p5, %p2060_p6  ;;  %p2082_p4 = scmp.lt.s32.totalorder %s2080_s1, %s2073_s25 }
  0x61   : > { %p2077_p13 = pneg %p2076_p12  ;;  %p2083_p8 = por %p2082_p4, %p2081_p9 }
  0x63   : > { %p2084_p11 = pnand %p2083_p8, %p2077_p13 }
  0x65   : > { %2087 = shalt.err (!%p2084_p11)
}
  0x66   : > { %s2954_s15 = sld [smem:[#allocation17_spill]]  ;;  %s1263_s18 = sadd.s32 4294967294, %s2304_s28  }
  0x67   : > { %1703 = dma.hbm_to_vmem [thread:$0]  (!%p2539_p2), %s2520_s12, 512, %s2543_s4, %s190_s2  }
  0x68   : > { %p98_p1 = scmp.eq.s32.totalorder %s2439_s10, 0  ;;  %s100_s8 = sadd.s32 1, %s2260_s17 }
  0x69   : > { %p107_p7 = scmp.ne.s32.totalorder %s2260_s17, %s2256_s16  ;;  %p2955_p13 = scmp.eq.s32.totalorder %s2304_s28, 0 }
  0x6a   : > { %s2578_s11 = scalar_select %p98_p1, %s2260_s17, %s100_s8  }
  0x6b   : > { %p109_p6 = por %p107_p7, %p2955_p13  ;;  %p2956_p3 = scmp.eq.s32.totalorder %s2500_s7, 0 }
  0x6c   : > { %p113_p9 = scmp.ne.s32.totalorder %s2256_s16, %s2954_s15  ;;  %p137_p5 = scmp.eq.s32.totalorder %s2500_s7, 3 }
  0x6d   : > { %p143_p12 = scmp.eq.s32.totalorder %s1263_s18, 3  ;;  %s234_s9 = sand.u32 1, %s2260_s17  }
  0x6e   : > { %p2584_p0 = por %p113_p9, %p2956_p3  ;;  %s1299_s25 = sshll.u32 %s2300_s27, 6 }
  0x6f   : > { %p2591_p2 = por %p137_p5, %p107_p7  ;;  %p2595_p4 = por %p143_p12, %p113_p9 }
  0x70   : > { %s2957_s30 = scalar_select %p2584_p0, 1, 0 }
  0x71   : > { %s2958_s12 = scalar_select %p2591_p2, 1, 0 }
  0x72   : > { %s2959_s10 = scalar_select %p2595_p4, 1, 0 }
  0x73   : > { %s1274_s4 = sshll.u32 %s234_s9, 2  ;;  %s2960_s14 = sld [smem:[#allocation25_spill]] }
  0x74   : > { %p2961_p8 = scmp.lt.s32.totalorder %s2304_s28, 4  ;;  %s236_s18 = scalar_lea.vmem [#allocation8], %s1274_s4 }
  0x75   : > { %s244_s8 = sshll.u32 %s236_s18, 4  ;;  %s245_s8 = int_to_ptr.vmem [resolvable:$true] %s244_s8 }
  0x76   : > { %p2606_p11 = pnand %p2961_p8, %p109_p6 }
  0x78   : > { %p2090_p7 = pneg %p2606_p11 }
  0x79   : > { %s2602_s1 = scalar_lea.hbm %s2960_s14, %s1299_s25  ;;  %s2093_s13 = scalar_lea.hbm %s2960_s14, 128 }
  0x7a   : > { %s2088_s9 = scalar_lea.hbm %s2602_s1, 64  ;;  %p2094_p6 = scmp.lt.u32.totalorder %s2602_s1, %s2960_s14 }
  0x7b   : > { %p2089_p1 = scmp.ne.s32.totalorder %s2602_s1, %s2088_s9  ;;  %p2095_p3 = scmp.lt.u32.totalorder %s2093_s13, %s2088_s9 }
  0x7c   : > { %p2097_p12 = scmp.lt.u32.totalorder %s2088_s9, %s2602_s1 }
  0x7d   : > { %p2091_p9 = pnand %p2090_p7, %p2089_p1  ;;  %p2096_p5 = por %p2095_p3, %p2094_p6 }
  0x7f   : > { %p2092_p13 = pneg %p2091_p9  ;;  %p2098_p8 = por %p2097_p12, %p2096_p5 }
  0x81   : > { %p2099_p4 = pnand %p2098_p8, %p2092_p13 }
  0x83   : > { %2102 = shalt.err (!%p2099_p4)
}
  0x84   : > { %s2103_s4 = scalar_lea.vmem %s245_s8, 64  ;;  %s2311_s18 = smov [#allocation8]  }
  0x85   : > { %p2104_p2 = scmp.ne.s32.totalorder %s245_s8, %s2103_s4  ;;  %s2108_s25 = sshll.u32 %s2311_s18, 4  ;;  %s2109_s25 = int_to_ptr.vmem [resolvable:$false] %s2108_s25 }
  0x86   : > { %s2110_s2 = scalar_lea.vmem %s2109_s25, 128  ;;  %p2111_p0 = scmp.lt.s32.totalorder %s245_s8, %s2109_s25 }
  0x87   : > { %p2106_p1 = pnand %p2104_p2, %p2090_p7  ;;  %p2112_p10 = scmp.lt.s32.totalorder %s2110_s2, %s2103_s4 }
  0x89   : > { %p2107_p9 = pneg %p2106_p1  ;;  %p2113_p3 = por %p2112_p10, %p2111_p0 }
  0x8b   : > { %p2114_p6 = pnand %p2113_p3, %p2107_p9 }
  0x8d   : > { %2117 = shalt.err (!%p2114_p6)
}
  0x8e   : > { %1709 = dma.hbm_to_vmem [thread:$0]  (!%p2606_p11), %s2602_s1, 64, %s245_s8, %s2465_s3  }
  0x8f   : > { %p2963_p4 = scmp.ne.s32.totalorder %s2947_s24, 0 }
  0x90   : > { %s255_s0 = sand.u32 (!%p2963_p4), 1, %s2280_s22   ;;  %p2964_p2 = scmp.ne.s32.totalorder (!%p2963_p4), %s2949_s6, 0 }
  0x91   : > { %253 = sbr.rel (%p2963_p4) target bundleno = 585 (0x249), region = 32  ;;  %s1278_s27 = sshll.u32 (!%p2963_p4), %s255_s0, 5 }
  0x92   : > { %s256_s9 = scalar_lea.sflag (!%p2963_p4), [#allocation4], %s255_s0  ;;  %s2635_s13 = scalar_lea.vmem (!%p2963_p4), [#allocation3], %s1278_s27 }
  0x98   : > { %2231 = dma.done.wait (%p2964_p2), %s256_s9, 512  }
  0x99   : > { %2233 = vsyncadd (%p2964_p2), %s256_s9, 4294966784  ;;  %s264_s15 = sand.u32 1, %s2500_s7   ;;  %s266_s3 = sand.u32 1, %s2268_s19  }
  0x9a   : > { %s1279_s1 = sshll.u32 %s266_s3, 10  ;;  %s265_s24 = scalar_lea.sflag [#allocation7], %s264_s15 }
  0x9b   : > { %s2643_s8 = scalar_lea.vmem [#allocation6], %s1279_s1  ;;  %p2965_p10 = scmp.ne.s32.totalorder %s2951_s21, 0 }
  0x9d   : > { %2235 = dma.done.wait (%p2965_p10), %s265_s24, 16384  }
  0x9e   : > { %2237 = vsyncadd (%p2965_p10), %s265_s24, 4294950912  ;;  %s2650_s4 = sand.u32 1, %s2256_s16   ;;  %p2966_p0 = scmp.ne.s32.totalorder %s2957_s30, 0 }
  0x9f   : > { %s1280_s6 = sshll.u32 %s2650_s4, 2 }
  0xa0   : > { %s2653_s18 = scalar_lea.vmem [#allocation8], %s1280_s6 }
  0xa1   : > { %2239 = dma.done.wait (%p2966_p0), %s265_s24, 64  }
  0xa2   : > { %2241 = vsyncadd (%p2966_p0), %s265_s24, 4294967232  ;;  %s1281_s7 = sshll.u32 %s2650_s4, 5  ;;  %s2967_s21 = sld [smem:[#allocation18_spill]] }
  0xa3   : > { %s2660_s25 = scalar_lea.vmem [#allocation9], %s1281_s7  ;;  %s2662_s2 = scalar_lea.vmem [#allocation10], %s1281_s7 }
  0xa8   : > { %p1283_p11 = scmp.ne.s32.totalorder %s2967_s21, 0 }
  0xa9   : > { %v2312_v0 = vmov (!%p1283_p11), 0.0  }
  0xaa   : > { %327 = sbr.rel (%p1283_p11) target bundleno = 177 (0xb1), region = 48  ;;  %328 = vst [vmem:[#allocation2] sm:$0xff] (!%p1283_p11), %v2312_v0  ;;  %329 = vst [vmem:[#allocation2 + $0x8] sm:$0xff] (!%p1283_p11), %v2312_v0 }
  0xab   : > { %330 = vst [vmem:[#allocation2 + $0x10] sm:$0xff] (!%p1283_p11), %v2312_v0  ;;  %331 = vst [vmem:[#allocation2 + $0x18] sm:$0xff] (!%p1283_p11), %v2312_v0 }
  0xb1 PF: > { %v1836_v1 = vld [vmem:[%s2643_s8 + $0x4] ss:$16 sps:$4 sm:$0xff]   ;;  %v1838_v2 = vld [vmem:[%s2643_s8 + $0xc] ss:$16 sps:$4 sm:$0xff]   ;;  %v1840_v3 = vld [vmem:[%s2643_s8] ss:$16 sps:$4 sm:$0xff]  }
  0xb2   : > { %1303 = vmatprep.subr.bf16.mxu0 %v1836_v1  ;;  %v1841_v4 = vld [vmem:[%s2643_s8 + $0x8] ss:$16 sps:$4 sm:$0xff]   ;;  %1431 = vmatprep.subr.bf16.mxu1 %v1838_v2  ;;  %v1842_v5 = vld [vmem:[%s2643_s8 + $0x24] ss:$16 sps:$4 sm:$0xff]   ;;  %v1844_v6 = vld [vmem:[%s2643_s8 + $0x2c] ss:$16 sps:$4 sm:$0xff]  }
  0xb3   : > { %1305 = vmatpush1.bf16.msra.mxu0 %v1840_v3  ;;  %1433 = vmatpush1.bf16.msra.mxu1 %v1841_v4  ;;  %v1846_v7 = vld [vmem:[%s2643_s8 + $0x20] ss:$16 sps:$4 sm:$0xff]   ;;  %v1847_v8 = vld [vmem:[%s2643_s8 + $0x28] ss:$16 sps:$4 sm:$0xff]   ;;  %v1848_v9 = vld [vmem:[%s2643_s8 + $0x44] ss:$16 sps:$4 sm:$0xff]  }
  0xb4   : > { %1307 = vmatprep.subr.bf16.mxu0 %v1842_v5  ;;  %1435 = vmatprep.subr.bf16.mxu1 %v1844_v6  ;;  %v1850_v10 = vld [vmem:[%s2643_s8 + $0x4c] ss:$16 sps:$4 sm:$0xff]   ;;  %v1852_v11 = vld [vmem:[%s2643_s8 + $0x40] ss:$16 sps:$4 sm:$0xff]   ;;  %v1853_v12 = vld [vmem:[%s2643_s8 + $0x48] ss:$16 sps:$4 sm:$0xff]  }
  0xb5   : > { %v1854_v13 = vld [vmem:[%s2643_s8 + $0x64] ss:$16 sps:$4 sm:$0xff]   ;;  %v1856_v14 = vld [vmem:[%s2643_s8 + $0x6c] ss:$16 sps:$4 sm:$0xff]   ;;  %v1858_v15 = vld [vmem:[%s2643_s8 + $0x60] ss:$16 sps:$4 sm:$0xff]  }
  0xb6   : > { %v1859_v16 = vld [vmem:[%s2643_s8 + $0x68] ss:$16 sps:$4 sm:$0xff]   ;;  %v1860_v17 = vld [vmem:[%s2643_s8 + $0x84] ss:$16 sps:$4 sm:$0xff]   ;;  %v1862_v18 = vld [vmem:[%s2643_s8 + $0x8c] ss:$16 sps:$4 sm:$0xff]  }
  0xb7   : > { %1309 = vmatpush1.bf16.msra.mxu0 %v1846_v7  ;;  %1437 = vmatpush1.bf16.msra.mxu1 %v1847_v8  ;;  %v1864_v19 = vld [vmem:[%s2643_s8 + $0x80] ss:$16 sps:$4 sm:$0xff]   ;;  %v1865_v20 = vld [vmem:[%s2643_s8 + $0x88] ss:$16 sps:$4 sm:$0xff]   ;;  %v1866_v21 = vld [vmem:[%s2643_s8 + $0xa4] ss:$16 sps:$4 sm:$0xff]  }
  0xb8   : > { %1311 = vmatprep.subr.bf16.mxu0 %v1848_v9  ;;  %1439 = vmatprep.subr.bf16.mxu1 %v1850_v10  ;;  %v1868_v22 = vld [vmem:[%s2643_s8 + $0xac] ss:$16 sps:$4 sm:$0xff]   ;;  %v1870_v23 = vld [vmem:[%s2643_s8 + $0xa0] ss:$16 sps:$4 sm:$0xff]   ;;  %v1871_v24 = vld [vmem:[%s2643_s8 + $0xa8] ss:$16 sps:$4 sm:$0xff]  }
  0xb9   : > { %v1872_v25 = vld [vmem:[%s2643_s8 + $0xc4] ss:$16 sps:$4 sm:$0xff]   ;;  %v1874_v26 = vld [vmem:[%s2643_s8 + $0xcc] ss:$16 sps:$4 sm:$0xff]   ;;  %v1876_v27 = vld [vmem:[%s2643_s8 + $0xc0] ss:$16 sps:$4 sm:$0xff]  }
  0xba   : > { %v1877_v28 = vld [vmem:[%s2643_s8 + $0xc8] ss:$16 sps:$4 sm:$0xff]   ;;  %v1878_v29 = vld [vmem:[%s2643_s8 + $0xe4] ss:$16 sps:$4 sm:$0xff]   ;;  %v1880_v30 = vld [vmem:[%s2643_s8 + $0xec] ss:$16 sps:$4 sm:$0xff]  }
  0xbb   : > { %1313 = vmatpush1.bf16.msra.mxu0 %v1852_v11  ;;  %1441 = vmatpush1.bf16.msra.mxu1 %v1853_v12  ;;  %v1882_v31 = vld [vmem:[%s2643_s8 + $0xe0] ss:$16 sps:$4 sm:$0xff]   ;;  %v1883_v32 = vld [vmem:[%s2643_s8 + $0xe8] ss:$16 sps:$4 sm:$0xff]   ;;  %v1884_v33 = vld [vmem:[%s2643_s8 + $0x104] ss:$16 sps:$4 sm:$0xff]  }
  0xbc   : > { %1315 = vmatprep.subr.bf16.mxu0 %v1854_v13  ;;  %1443 = vmatprep.subr.bf16.mxu1 %v1856_v14  ;;  %v1886_v34 = vld [vmem:[%s2643_s8 + $0x10c] ss:$16 sps:$4 sm:$0xff]   ;;  %v1888_v35 = vld [vmem:[%s2643_s8 + $0x100] ss:$16 sps:$4 sm:$0xff]   ;;  %v1889_v36 = vld [vmem:[%s2643_s8 + $0x108] ss:$16 sps:$4 sm:$0xff]  }
  0xbd   : > { %v1890_v37 = vld [vmem:[%s2643_s8 + $0x124] ss:$16 sps:$4 sm:$0xff]   ;;  %v1892_v38 = vld [vmem:[%s2643_s8 + $0x12c] ss:$16 sps:$4 sm:$0xff]   ;;  %v1894_v39 = vld [vmem:[%s2643_s8 + $0x120] ss:$16 sps:$4 sm:$0xff]  }
  0xbe   : > { %v1895_v40 = vld [vmem:[%s2643_s8 + $0x128] ss:$16 sps:$4 sm:$0xff]   ;;  %v1896_v41 = vld [vmem:[%s2643_s8 + $0x144] ss:$16 sps:$4 sm:$0xff]   ;;  %v1898_v42 = vld [vmem:[%s2643_s8 + $0x14c] ss:$16 sps:$4 sm:$0xff]  }
  0xbf   : > { %1317 = vmatpush1.bf16.msra.mxu0 %v1858_v15  ;;  %1445 = vmatpush1.bf16.msra.mxu1 %v1859_v16  ;;  %v1900_v43 = vld [vmem:[%s2643_s8 + $0x140] ss:$16 sps:$4 sm:$0xff]   ;;  %v1901_v44 = vld [vmem:[%s2643_s8 + $0x148] ss:$16 sps:$4 sm:$0xff]   ;;  %v1902_v45 = vld [vmem:[%s2643_s8 + $0x164] ss:$16 sps:$4 sm:$0xff]  }
  0xc0   : > { %1319 = vmatprep.subr.bf16.mxu0 %v1860_v17  ;;  %1447 = vmatprep.subr.bf16.mxu1 %v1862_v18  ;;  %v1904_v46 = vld [vmem:[%s2643_s8 + $0x16c] ss:$16 sps:$4 sm:$0xff]   ;;  %v1906_v48 = vld [vmem:[%s2643_s8 + $0x160] ss:$16 sps:$4 sm:$0xff]   ;;  %v1907_v49 = vld [vmem:[%s2643_s8 + $0x168] ss:$16 sps:$4 sm:$0xff]  }
  0xc1   : > { %v337_v47 = vld [vmem:[%s2635_s13 + $0x8] sm:$0xff]  ;;  %v1908_v50 = vld [vmem:[%s2643_s8 + $0x184] ss:$16 sps:$4 sm:$0xff]   ;;  %v1912_v52 = vld [vmem:[%s2643_s8 + $0x180] ss:$16 sps:$4 sm:$0xff]   ;;  %s2968_s30 = sld [smem:[#allocation18_spill]] }
  0xc2   : > { %788 = vmatprep.mubr.f32.mxu0 %v337_v47  ;;  %930 = vmatprep.mubr.f32.mxu1 %v337_v47  ;;  %v1910_v51 = vld [vmem:[%s2643_s8 + $0x18c] ss:$16 sps:$4 sm:$0xff]   ;;  %v1913_v53 = vld [vmem:[%s2643_s8 + $0x188] ss:$16 sps:$4 sm:$0xff]   ;;  %v1914_v54 = vld [vmem:[%s2643_s8 + $0x1a4] ss:$16 sps:$4 sm:$0xff]  }
  0xc3   : > { %1321 = vmatpush1.bf16.msra.mxu0 %v1864_v19  ;;  %1449 = vmatpush1.bf16.msra.mxu1 %v1865_v20  ;;  %v1916_v55 = vld [vmem:[%s2643_s8 + $0x1ac] ss:$16 sps:$4 sm:$0xff]   ;;  %v1918_v56 = vld [vmem:[%s2643_s8 + $0x1a0] ss:$16 sps:$4 sm:$0xff]   ;;  %v1919_v57 = vld [vmem:[%s2643_s8 + $0x1a8] ss:$16 sps:$4 sm:$0xff]  }
  0xc4   : > { %1323 = vmatprep.subr.bf16.mxu0 %v1866_v21  ;;  %1451 = vmatprep.subr.bf16.mxu1 %v1868_v22  ;;  %v1920_v58 = vld [vmem:[%s2643_s8 + $0x1c4] ss:$16 sps:$4 sm:$0xff]   ;;  %v1922_v59 = vld [vmem:[%s2643_s8 + $0x1cc] ss:$16 sps:$4 sm:$0xff]   ;;  %v1924_v60 = vld [vmem:[%s2643_s8 + $0x1c0] ss:$16 sps:$4 sm:$0xff]  }
  0xc5   : > { %v1925_v61 = vld [vmem:[%s2643_s8 + $0x1c8] ss:$16 sps:$4 sm:$0xff]   ;;  %v1926_v62 = vld [vmem:[%s2643_s8 + $0x1e4] ss:$16 sps:$4 sm:$0xff]   ;;  %v1928_v63 = vld [vmem:[%s2643_s8 + $0x1ec] ss:$16 sps:$4 sm:$0xff]  }
  0xc6   : > { %v1930_v0 = vld [vmem:[%s2643_s8 + $0x1e0] ss:$16 sps:$4 sm:$0xff]   ;;  %v1931_v1 = vld [vmem:[%s2643_s8 + $0x1e8] ss:$16 sps:$4 sm:$0xff]   ;;  %v1932_v2 = vld [vmem:[%s2643_s8 + $0x204] ss:$16 sps:$4 sm:$0xff]  }
  0xc7   : > { %1325 = vmatpush1.bf16.msra.mxu0 %v1870_v23  ;;  %1453 = vmatpush1.bf16.msra.mxu1 %v1871_v24  ;;  %v1935_v3 = vld [vmem:[%s2643_s8 + $0x20c] ss:$16 sps:$4 sm:$0xff]   ;;  %v1934_v4 = vld [vmem:[%s2643_s8 + $0x200] ss:$16 sps:$4 sm:$0xff]   ;;  %v1937_v5 = vld [vmem:[%s2643_s8 + $0x208] ss:$16 sps:$4 sm:$0xff]  }
  0xc8   : > { %1327 = vmatprep.subr.bf16.mxu0 %v1872_v25  ;;  %1455 = vmatprep.subr.bf16.mxu1 %v1874_v26  ;;  %v336_v6 = vld [vmem:[%s2635_s13] sm:$0xff]  ;;  %v1941_v8 = vld [vmem:[%s2643_s8 + $0x22c] ss:$16 sps:$4 sm:$0xff]   ;;  %v1943_v10 = vld [vmem:[%s2643_s8 + $0x228] ss:$16 sps:$4 sm:$0xff]   ;;  %p1284_p7 = scmp.ne.s32.totalorder %s2968_s30, 1 }
  0xc9   : > { %v1938_v7 = vld [vmem:[%s2643_s8 + $0x224] ss:$16 sps:$4 sm:$0xff]   ;;  %v1940_v9 = vld [vmem:[%s2643_s8 + $0x220] ss:$16 sps:$4 sm:$0xff]   ;;  %v1947_v12 = vld [vmem:[%s2643_s8 + $0x24c] ss:$16 sps:$4 sm:$0xff]  }
  0xca   : > { %v1944_v11 = vld [vmem:[%s2643_s8 + $0x244] ss:$16 sps:$4 sm:$0xff]   ;;  %v1946_v13 = vld [vmem:[%s2643_s8 + $0x240] ss:$16 sps:$4 sm:$0xff]   ;;  %v1949_v14 = vld [vmem:[%s2643_s8 + $0x248] ss:$16 sps:$4 sm:$0xff]  }
  0xcb   : > { %1329 = vmatpush1.bf16.msra.mxu0 %v1876_v27  ;;  %1457 = vmatpush1.bf16.msra.mxu1 %v1877_v28  ;;  %v1950_v15 = vld [vmem:[%s2643_s8 + $0x264] ss:$16 sps:$4 sm:$0xff]   ;;  %v1953_v16 = vld [vmem:[%s2643_s8 + $0x26c] ss:$16 sps:$4 sm:$0xff]   ;;  %v1952_v17 = vld [vmem:[%s2643_s8 + $0x260] ss:$16 sps:$4 sm:$0xff]  }
  0xcc   : > { %1331 = vmatprep.subr.bf16.mxu0 %v1878_v29  ;;  %1459 = vmatprep.subr.bf16.mxu1 %v1880_v30  ;;  %v1955_v18 = vld [vmem:[%s2643_s8 + $0x268] ss:$16 sps:$4 sm:$0xff]   ;;  %v1956_v19 = vld [vmem:[%s2643_s8 + $0x284] ss:$16 sps:$4 sm:$0xff]   ;;  %v1959_v20 = vld [vmem:[%s2643_s8 + $0x28c] ss:$16 sps:$4 sm:$0xff]  }
  0xcd   : > { %v1958_v21 = vld [vmem:[%s2643_s8 + $0x280] ss:$16 sps:$4 sm:$0xff]   ;;  %v1961_v22 = vld [vmem:[%s2643_s8 + $0x288] ss:$16 sps:$4 sm:$0xff]   ;;  %v1962_v23 = vld [vmem:[%s2643_s8 + $0x2a4] ss:$16 sps:$4 sm:$0xff]  }
  0xce   : > { %v1965_v24 = vld [vmem:[%s2643_s8 + $0x2ac] ss:$16 sps:$4 sm:$0xff]   ;;  %v1964_v25 = vld [vmem:[%s2643_s8 + $0x2a0] ss:$16 sps:$4 sm:$0xff]   ;;  %v1967_v26 = vld [vmem:[%s2643_s8 + $0x2a8] ss:$16 sps:$4 sm:$0xff]  }
  0xcf   : > { %1333 = vmatpush1.bf16.msra.mxu0 %v1882_v31  ;;  %1461 = vmatpush1.bf16.msra.mxu1 %v1883_v32  ;;  %v1968_v27 = vld [vmem:[%s2643_s8 + $0x2c4] ss:$16 sps:$4 sm:$0xff]   ;;  %v1971_v28 = vld [vmem:[%s2643_s8 + $0x2cc] ss:$16 sps:$4 sm:$0xff]   ;;  %v1970_v30 = vld [vmem:[%s2643_s8 + $0x2c0] ss:$16 sps:$4 sm:$0xff]  }
  0xd0   : > { %1335 = vmatprep.subr.bf16.mxu0 %v1884_v33  ;;  %1463 = vmatprep.subr.bf16.mxu1 %v1886_v34  ;;  %v339_v29 = vld [vmem:[%s2635_s13 + $0x18] sm:$0xff]  ;;  %v1974_v32 = vld [vmem:[%s2643_s8 + $0x2e4] ss:$16 sps:$4 sm:$0xff]   ;;  %v1976_v34 = vld [vmem:[%s2643_s8 + $0x2e0] ss:$16 sps:$4 sm:$0xff]  }
  0xd1   : > { %v1973_v31 = vld [vmem:[%s2643_s8 + $0x2c8] ss:$16 sps:$4 sm:$0xff]   ;;  %v1977_v33 = vld [vmem:[%s2643_s8 + $0x2ec] ss:$16 sps:$4 sm:$0xff]  }
  0xd2   : > { %v1997_v47 = vld [vmem:[%s2643_s8 + $0x348] ss:$16 sps:$4 sm:$0xff]  }
  0xd3   : > { %1337 = vmatpush1.bf16.msra.mxu0 %v1888_v35  ;;  %1465 = vmatpush1.bf16.msra.mxu1 %v1889_v36  ;;  %v1979_v35 = vld [vmem:[%s2643_s8 + $0x2e8] ss:$16 sps:$4 sm:$0xff]   ;;  %v1980_v36 = vld [vmem:[%s2643_s8 + $0x304] ss:$16 sps:$4 sm:$0xff]  }
  0xd4   : > { %1339 = vmatprep.subr.bf16.mxu0 %v1890_v37  ;;  %1467 = vmatprep.subr.bf16.mxu1 %v1892_v38  ;;  %v1983_v37 = vld [vmem:[%s2643_s8 + $0x30c] ss:$16 sps:$4 sm:$0xff]   ;;  %v1982_v38 = vld [vmem:[%s2643_s8 + $0x300] ss:$16 sps:$4 sm:$0xff]  }
  0xd7   : > { %1341 = vmatpush1.bf16.msra.mxu0 %v1894_v39  ;;  %1469 = vmatpush1.bf16.msra.mxu1 %v1895_v40  ;;  %v1985_v39 = vld [vmem:[%s2643_s8 + $0x308] ss:$16 sps:$4 sm:$0xff]   ;;  %v1986_v40 = vld [vmem:[%s2643_s8 + $0x324] ss:$16 sps:$4 sm:$0xff]  }
  0xd8   : > { %1343 = vmatprep.subr.bf16.mxu0 %v1896_v41  ;;  %1471 = vmatprep.subr.bf16.mxu1 %v1898_v42  ;;  %v1989_v41 = vld [vmem:[%s2643_s8 + $0x32c] ss:$16 sps:$4 sm:$0xff]   ;;  %v1988_v42 = vld [vmem:[%s2643_s8 + $0x320] ss:$16 sps:$4 sm:$0xff]  }
  0xdb   : > { %1345 = vmatpush1.bf16.msra.mxu0 %v1900_v43  ;;  %1473 = vmatpush1.bf16.msra.mxu1 %v1901_v44  ;;  %v1991_v43 = vld [vmem:[%s2643_s8 + $0x328] ss:$16 sps:$4 sm:$0xff]   ;;  %v1992_v44 = vld [vmem:[%s2643_s8 + $0x344] ss:$16 sps:$4 sm:$0xff]  }
  0xdc   : > { %1347 = vmatprep.subr.bf16.mxu0 %v1902_v45  ;;  %1475 = vmatprep.subr.bf16.mxu1 %v1904_v46  ;;  %v1995_v45 = vld [vmem:[%s2643_s8 + $0x34c] ss:$16 sps:$4 sm:$0xff]   ;;  %v1994_v46 = vld [vmem:[%s2643_s8 + $0x340] ss:$16 sps:$4 sm:$0xff]  }
  0xdf   : > { %1349 = vmatpush1.bf16.msra.mxu0 %v1906_v48  ;;  %1477 = vmatpush1.bf16.msra.mxu1 %v1907_v49  ;;  %v1998_v48 = vld [vmem:[%s2643_s8 + $0x364] ss:$16 sps:$4 sm:$0xff]   ;;  %v2001_v49 = vld [vmem:[%s2643_s8 + $0x36c] ss:$16 sps:$4 sm:$0xff]  }
  0xe0   : > { %1351 = vmatprep.subr.bf16.mxu0 %v1908_v50  ;;  %1479 = vmatprep.subr.bf16.mxu1 %v1910_v51  ;;  %v2000_v50 = vld [vmem:[%s2643_s8 + $0x360] ss:$16 sps:$4 sm:$0xff]   ;;  %v2003_v51 = vld [vmem:[%s2643_s8 + $0x368] ss:$16 sps:$4 sm:$0xff]  }
  0xe3   : > { %1353 = vmatpush1.bf16.msra.mxu0 %v1912_v52  ;;  %1481 = vmatpush1.bf16.msra.mxu1 %v1913_v53  ;;  %v2004_v52 = vld [vmem:[%s2643_s8 + $0x384] ss:$16 sps:$4 sm:$0xff]   ;;  %v2007_v53 = vld [vmem:[%s2643_s8 + $0x38c] ss:$16 sps:$4 sm:$0xff]  }
  0xe4   : > { %1355 = vmatprep.subr.bf16.mxu0 %v1914_v54  ;;  %1483 = vmatprep.subr.bf16.mxu1 %v1916_v55  ;;  %v2006_v54 = vld [vmem:[%s2643_s8 + $0x380] ss:$16 sps:$4 sm:$0xff]   ;;  %v2009_v55 = vld [vmem:[%s2643_s8 + $0x388] ss:$16 sps:$4 sm:$0xff]  }
  0xe7   : > { %1357 = vmatpush1.bf16.msra.mxu0 %v1918_v56  ;;  %1485 = vmatpush1.bf16.msra.mxu1 %v1919_v57  ;;  %v2010_v56 = vld [vmem:[%s2643_s8 + $0x3a4] ss:$16 sps:$4 sm:$0xff]   ;;  %v2013_v57 = vld [vmem:[%s2643_s8 + $0x3ac] ss:$16 sps:$4 sm:$0xff]  }
  0xe8   : > { %1359 = vmatprep.subr.bf16.mxu0 %v1920_v58  ;;  %1487 = vmatprep.subr.bf16.mxu1 %v1922_v59  ;;  %v2012_v58 = vld [vmem:[%s2643_s8 + $0x3a0] ss:$16 sps:$4 sm:$0xff]   ;;  %v2015_v59 = vld [vmem:[%s2643_s8 + $0x3a8] ss:$16 sps:$4 sm:$0xff]  }
  0xeb   : > { %1361 = vmatpush1.bf16.msra.mxu0 %v1924_v60  ;;  %1489 = vmatpush1.bf16.msra.mxu1 %v1925_v61  ;;  %v2016_v60 = vld [vmem:[%s2643_s8 + $0x3c4] ss:$16 sps:$4 sm:$0xff]   ;;  %v2019_v61 = vld [vmem:[%s2643_s8 + $0x3cc] ss:$16 sps:$4 sm:$0xff]  }
  0xec   : > { %1363 = vmatprep.subr.bf16.mxu0 %v1926_v62  ;;  %1491 = vmatprep.subr.bf16.mxu1 %v1928_v63  ;;  %v2018_v62 = vld [vmem:[%s2643_s8 + $0x3c0] ss:$16 sps:$4 sm:$0xff]   ;;  %v2021_v63 = vld [vmem:[%s2643_s8 + $0x3c8] ss:$16 sps:$4 sm:$0xff]  }
  0xef   : > { %1365 = vmatpush1.bf16.msra.mxu0 %v1930_v0  ;;  %1493 = vmatpush1.bf16.msra.mxu1 %v1931_v1  ;;  %v2022_v0 = vld [vmem:[%s2643_s8 + $0x3e4] ss:$16 sps:$4 sm:$0xff]   ;;  %v2025_v1 = vld [vmem:[%s2643_s8 + $0x3ec] ss:$16 sps:$4 sm:$0xff]  }
  0xf0   : > { %1367 = vmatprep.subr.bf16.mxu0 %v1932_v2  ;;  %1495 = vmatprep.subr.bf16.mxu1 %v1935_v3  ;;  %v2024_v2 = vld [vmem:[%s2643_s8 + $0x3e0] ss:$16 sps:$4 sm:$0xff]   ;;  %v2027_v3 = vld [vmem:[%s2643_s8 + $0x3e8] ss:$16 sps:$4 sm:$0xff]  }
  0xf2   : > { %789 = vmatmul.mubr.f32.vlgmr.msra.gmra.mrb[0].mxu0 %v336_v6  ;;  %931 = vmatmul.mubr.f32.vlgmr.msra.gmra.mrb[0].mxu1 %v336_v6  ;;  %v334_v6 = vld [vmem:[#allocation2 + $0x10] sm:$0xff] }
  0xf3   : > { %1369 = vmatpush1.bf16.msra.mxu0 %v1934_v4  ;;  %1497 = vmatpush1.bf16.msra.mxu1 %v1937_v5  ;;  %v338_v4 = vld [vmem:[%s2635_s13 + $0x10] sm:$0xff]  ;;  %v332_v5 = vld [vmem:[#allocation2] sm:$0xff] }
  0xf4   : > { %1371 = vmatprep.subr.bf16.mxu0 %v1938_v7  ;;  %1499 = vmatprep.subr.bf16.mxu1 %v1941_v8  ;;  %v333_v7 = vld [vmem:[#allocation2 + $0x8] sm:$0xff]  ;;  %v335_v8 = vld [vmem:[#allocation2 + $0x18] sm:$0xff] }
  0xf5   : > { %859 = vmatprep.mubr.f32.mxu0 %v339_v29  ;;  %1001 = vmatprep.mubr.f32.mxu1 %v339_v29 }
  0xf7   : > { %1373 = vmatpush1.bf16.msra.mxu0 %v1940_v9  ;;  %1501 = vmatpush1.bf16.msra.mxu1 %v1943_v10 }
  0xf8   : > { %1375 = vmatprep.subr.bf16.mxu0 %v1944_v11  ;;  %1503 = vmatprep.subr.bf16.mxu1 %v1947_v12 }
  0xfb   : > { %1377 = vmatpush1.bf16.msra.mxu0 %v1946_v13  ;;  %1505 = vmatpush1.bf16.msra.mxu1 %v1949_v14 }
  0xfc   : > { %1379 = vmatprep.subr.bf16.mxu0 %v1950_v15  ;;  %1507 = vmatprep.subr.bf16.mxu1 %v1953_v16 }
  0xff   : > { %1381 = vmatpush1.bf16.msra.mxu0 %v1952_v17  ;;  %1509 = vmatpush1.bf16.msra.mxu1 %v1955_v18  ;;  %v1025_v17 = vlaneseq (!%p1284_p7) }
 0x100   : > { %1383 = vmatprep.subr.bf16.mxu0 %v1956_v19  ;;  %1511 = vmatprep.subr.bf16.mxu1 %v1959_v20  ;;  %v1023_v19 = vld [vmem:[%s2653_s18] sm:$0xf] (!%p1284_p7) }
 0x101   : > { %v1026_v18 = vshrl.u32 (!%p1284_p7), %v1025_v17, 7 }
 0x103   : > { %1385 = vmatpush1.bf16.msra.mxu0 %v1958_v21  ;;  %1513 = vmatpush1.bf16.msra.mxu1 %v1961_v22  ;;  %v1027_v21 = vsub.s32 (!%p1284_p7), 0, %v1026_v18  ;;  %v1031_v22 = vsub.s32 (!%p1284_p7), 1, %v1026_v18 }
 0x104   : > { %1387 = vmatprep.subr.bf16.mxu0 %v1962_v23  ;;  %1515 = vmatprep.subr.bf16.mxu1 %v1965_v24  ;;  %v1035_v23 = vsub.s32 (!%p1284_p7), 2, %v1026_v18  ;;  %v1039_v24 = vsub.s32 (!%p1284_p7), 3, %v1026_v18 }
 0x105   : > { %v1032_v29 = vrot.slane (!%p1284_p7), %v1023_v19, %v1031_v22 }
 0x107   : > { %1389 = vmatpush1.bf16.msra.mxu0 %v1964_v25  ;;  %1517 = vmatpush1.bf16.msra.mxu1 %v1967_v26 }
 0x108   : > { %1391 = vmatprep.subr.bf16.mxu0 %v1968_v27  ;;  %1519 = vmatprep.subr.bf16.mxu1 %v1971_v28  ;;  %v1028_v28 = vrot.slane (!%p1284_p7), %v1023_v19, %v1027_v21 }
 0x10b   : > { %1393 = vmatpush1.bf16.msra.mxu0 %v1970_v30  ;;  %1521 = vmatpush1.bf16.msra.mxu1 %v1973_v31  ;;  %v1036_v30 = vrot.slane (!%p1284_p7), %v1023_v19, %v1035_v23  ;;  %v1040_v31 = vrot.slane (!%p1284_p7), %v1023_v19, %v1039_v24 }
 0x10c   : > { %1395 = vmatprep.subr.bf16.mxu0 %v1974_v32  ;;  %1523 = vmatprep.subr.bf16.mxu1 %v1977_v33 }
 0x10f   : > { %1397 = vmatpush1.bf16.msra.mxu0 %v1976_v34  ;;  %1525 = vmatpush1.bf16.msra.mxu1 %v1979_v35 }
 0x110   : > { %1399 = vmatprep.subr.bf16.mxu0 %v1980_v36  ;;  %1527 = vmatprep.subr.bf16.mxu1 %v1983_v37  ;;  %v2313_v36 = vmov (!%p1284_p7), 0.0  }
 0x113   : > { %1401 = vmatpush1.bf16.msra.mxu0 %v1982_v38  ;;  %1529 = vmatpush1.bf16.msra.mxu1 %v1985_v39 }
 0x114   : > { %1403 = vmatprep.subr.bf16.mxu0 %v1986_v40  ;;  %1531 = vmatprep.subr.bf16.mxu1 %v1989_v41 }
 0x117   : > { %1405 = vmatpush1.bf16.msra.mxu0 %v1988_v42  ;;  %1533 = vmatpush1.bf16.msra.mxu1 %v1991_v43 }
 0x118   : > { %1407 = vmatprep.subr.bf16.mxu0 %v1992_v44  ;;  %1535 = vmatprep.subr.bf16.mxu1 %v1995_v45 }
 0x11b   : > { %1409 = vmatpush1.bf16.msra.mxu0 %v1994_v46  ;;  %1537 = vmatpush1.bf16.msra.mxu1 %v1997_v47 }
 0x11c   : > { %1411 = vmatprep.subr.bf16.mxu0 %v1998_v48  ;;  %1539 = vmatprep.subr.bf16.mxu1 %v2001_v49 }
 0x11f   : > { %1413 = vmatpush1.bf16.msra.mxu0 %v2000_v50  ;;  %1541 = vmatpush1.bf16.msra.mxu1 %v2003_v51 }
 0x120   : > { %1415 = vmatprep.subr.bf16.mxu0 %v2004_v52  ;;  %1543 = vmatprep.subr.bf16.mxu1 %v2007_v53 }
 0x123   : > { %1417 = vmatpush1.bf16.msra.mxu0 %v2006_v54  ;;  %1545 = vmatpush1.bf16.msra.mxu1 %v2009_v55 }
 0x124   : > { %1419 = vmatprep.subr.bf16.mxu0 %v2010_v56  ;;  %1547 = vmatprep.subr.bf16.mxu1 %v2013_v57 }
 0x127   : > { %1421 = vmatpush1.bf16.msra.mxu0 %v2012_v58  ;;  %1549 = vmatpush1.bf16.msra.mxu1 %v2015_v59 }
 0x128   : > { %1423 = vmatprep.subr.bf16.mxu0 %v2016_v60  ;;  %1551 = vmatprep.subr.bf16.mxu1 %v2019_v61 }
 0x12b   : > { %1425 = vmatpush1.bf16.msra.mxu0 %v2018_v62  ;;  %1553 = vmatpush1.bf16.msra.mxu1 %v2021_v63 }
 0x12c   : > { %1427 = vmatprep.subr.bf16.mxu0 %v2022_v0  ;;  %1555 = vmatprep.subr.bf16.mxu1 %v2025_v1 }
 0x12f   : > { %1429 = vmatpush1.bf16.msra.mxu0 %v2024_v2  ;;  %1557 = vmatpush1.bf16.msra.mxu1 %v2027_v3 }
 0x132   : > { %860 = vmatmul.mubr.f32.vlgmr.msra.gmra.mrb[0].mxu0 %v338_v4  ;;  %1002 = vmatmul.mubr.f32.vlgmr.msra.gmra.mrb[0].mxu1 %v338_v4 }
 0x203   : > { %1018 = sbr.rel (%p1284_p7) target bundleno = 534 (0x216), region = 52 }
 0x205   : > { %v861_v9 = vpop.f32.mrb[0].mxu0  ;;  %v1003_v10 = vpop.f32.mrb[0].mxu1 }
 0x206   : > { %v1008_v11 = vadd.f32 %v861_v9, %v332_v5  ;;  %v1010_v12 = vadd.f32 %v1003_v10, %v334_v6  ;;  %v863_v13 = vpop.f32.mrb[1].mxu0  ;;  %v1005_v14 = vpop.f32.mrb[1].mxu1 }
 0x207   : > { %v1009_v15 = vadd.f32 %v863_v13, %v333_v7  ;;  %v1011_v16 = vadd.f32 %v1005_v14, %v335_v8 }
 0x208   : > { %1012 = vst [vmem:[#allocation2] sm:$0xff] %v1008_v11  ;;  %1014 = vst [vmem:[#allocation2 + $0x10] sm:$0xff] %v1010_v12 }
 0x209   : > { %1013 = vst [vmem:[#allocation2 + $0x8] sm:$0xff] %v1009_v15  ;;  %1015 = vst [vmem:[#allocation2 + $0x18] sm:$0xff] %v1011_v16 }
 0x20f   : > { %v1019_v20 = vld [vmem:[#allocation2] sm:$0xff]  ;;  %v1021_v26 = vld [vmem:[#allocation2 + $0x10] sm:$0xff] }
 0x210   : > { %v1020_v25 = vld [vmem:[#allocation2 + $0x8] sm:$0xff]  ;;  %v1022_v27 = vld [vmem:[#allocation2 + $0x18] sm:$0xff]  ;;  %v1045_v32 = vadd.f32 %v1028_v28, %v1019_v20  ;;  %v1047_v34 = vadd.f32 %v1036_v30, %v1021_v26 }
 0x211   : > { %v1046_v33 = vadd.f32 %v1032_v29, %v1020_v25  ;;  %v1048_v35 = vadd.f32 %v1040_v31, %v1022_v27 }
 0x212   : > { %1049 = vst [vmem:[%s2662_s2] sm:$0xff] %v1045_v32  ;;  %1051 = vst [vmem:[%s2662_s2 + $0x10] sm:$0xff] %v1047_v34  ;;  %vm1053_vm0 = vcmp.ge.f32.partialorder %v1045_v32, 0.0  ;;  %vm1055_vm2 = vcmp.ge.f32.partialorder %v1047_v34, 0.0 }
 0x213   : > { %1050 = vst [vmem:[%s2662_s2 + $0x8] sm:$0xff] %v1046_v33  ;;  %1052 = vst [vmem:[%s2662_s2 + $0x18] sm:$0xff] %v1048_v35  ;;  %vm1054_vm1 = vcmp.ge.f32.partialorder %v1046_v33, 0.0  ;;  %vm1056_vm3 = vcmp.ge.f32.partialorder %v1048_v35, 0.0  ;;  %v1285_v37 = vsel %vm1053_vm0, 1.0, %v2313_v36  ;;  %v1287_v39 = vsel %vm1055_vm2, 1.0, %v2313_v36 }
 0x214   : > { %v1286_v38 = vsel %vm1054_vm1, 1.0, %v2313_v36  ;;  %v1288_v40 = vsel %vm1056_vm3, 1.0, %v2313_v36  ;;  %1065 = vst [vmem:[%s2660_s25] sm:$0xff] %v1285_v37  ;;  %1067 = vst [vmem:[%s2660_s25 + $0x10] sm:$0xff] %v1287_v39 }
 0x215   : > { %1066 = vst [vmem:[%s2660_s25 + $0x8] sm:$0xff] %v1286_v38  ;;  %1068 = vst [vmem:[%s2660_s25 + $0x18] sm:$0xff] %v1288_v40 }
 0x216 PF: > { %s2969_s0 = sld [smem:[#allocation19_spill]]  ;;  %s2970_s15 = sld [smem:[#allocation26_spill]] }
 0x217   : > { %s1089_s24 = sshll.u32 %s2660_s25, 4  ;;  %s1070_s8 = scalar_lea.sflag [#allocation5], %s2650_s4  ;;  %s1090_s24 = int_to_ptr.vmem [resolvable:$true] %s1089_s24 }
 0x218   : > { %s2118_s6 = scalar_lea.vmem %s1090_s24, 512  ;;  %p2972_p5 = scmp.ne.s32.totalorder %s2958_s12, 0 }
 0x219   : > { %p2119_p13 = scmp.ne.s32.totalorder %s1090_s24, %s2118_s6  ;;  %s2314_s18 = smov [#allocation9]  }
 0x21a   : > { %s2122_s7 = sshll.u32 %s2314_s18, 4  ;;  %s2123_s7 = int_to_ptr.vmem [resolvable:$false] %s2122_s7 }
 0x21b   : > { %p2120_p12 = pnand %p2119_p13, %p2972_p5  ;;  %s2124_s21 = scalar_lea.vmem %s2123_s7, 1024 }
 0x21c   : > { %s1300_s27 = sshll.u32 %s2969_s0, 9  ;;  %s2971_s3 = smov %s2970_s15 }
 0x21d   : > { %s2813_s1 = scalar_lea.hbm %s2970_s15, %s1300_s27  ;;  %p2121_p8 = pneg %p2120_p12 }
 0x21e   : > { %p2125_p1 = scmp.lt.s32.totalorder %s1090_s24, %s2123_s7  ;;  %p2126_p9 = scmp.lt.s32.totalorder %s2124_s21, %s2118_s6 }
 0x220   : > { %p2127_p3 = por %p2126_p9, %p2125_p1 }
 0x222   : > { %p2128_p6 = pnand %p2127_p3, %p2121_p8 }
 0x224   : > { %2131 = shalt.err (!%p2128_p6)
}
 0x225   : > { %s2132_s25 = scalar_lea.hbm %s2813_s1, 512  ;;  %s2136_s13 = scalar_lea.hbm %s2971_s3, 1024 }
 0x226   : > { %p2133_p4 = scmp.ne.s32.totalorder %s2813_s1, %s2132_s25  ;;  %p2137_p0 = scmp.lt.u32.totalorder %s2813_s1, %s2971_s3 }
 0x227   : > { %p2138_p11 = scmp.lt.u32.totalorder %s2136_s13, %s2132_s25  ;;  %p2140_p13 = scmp.lt.u32.totalorder %s2132_s25, %s2813_s1 }
 0x228   : > { %p2134_p2 = pnand %p2133_p4, %p2972_p5 }
 0x229   : > { %p2139_p7 = por %p2138_p11, %p2137_p0 }
 0x22a   : > { %p2135_p10 = pneg %p2134_p2 }
 0x22b   : > { %p2141_p12 = por %p2140_p13, %p2139_p7 }
 0x22d   : > { %p2142_p8 = pnand %p2141_p12, %p2135_p10 }
 0x22f   : > { %2145 = shalt.err (!%p2142_p8)
}
 0x230   : > { %1696 = dma.vmem_to_hbm [thread:$0]  (%p2972_p5), %s1090_s24, 512, %s2813_s1, %s1070_s8  }
 0x231   : > { %s2973_s21 = sld [smem:[#allocation27_spill]]  ;;  %s1103_s13 = sshll.u32 %s2662_s2, 4  ;;  %s1104_s13 = int_to_ptr.vmem [resolvable:$true] %s1103_s13 }
 0x232   : > { %s1075_s25 = scalar_lea.sflag [#allocation11], %s2650_s4  ;;  %s2146_s15 = scalar_lea.vmem %s1104_s13, 512 }
 0x233   : > { %p2147_p1 = scmp.ne.s32.totalorder %s1104_s13, %s2146_s15  ;;  %s2315_s18 = smov [#allocation10]  }
 0x234   : > { %s2150_s3 = sshll.u32 %s2315_s18, 4  ;;  %s2151_s3 = int_to_ptr.vmem [resolvable:$false] %s2150_s3 }
 0x235   : > { %p2148_p9 = pnand %p2147_p1, %p2972_p5  ;;  %s2152_s14 = scalar_lea.vmem %s2151_s3, 1024 }
 0x236   : > { %p2153_p6 = scmp.lt.s32.totalorder %s1104_s13, %s2151_s3  ;;  %p2154_p4 = scmp.lt.s32.totalorder %s2152_s14, %s2146_s15 }
 0x237   : > { %s2974_s30 = smov %s2973_s21  ;;  %s2839_s9 = scalar_lea.hbm %s2973_s21, %s1300_s27 }
 0x238   : > { %p2149_p3 = pneg %p2148_p9  ;;  %p2155_p2 = por %p2154_p4, %p2153_p6 }
 0x23a   : > { %p2156_p10 = pnand %p2155_p2, %p2149_p3 }
 0x23c   : > { %2159 = shalt.err (!%p2156_p10)
}
 0x23d   : > { %s2160_s4 = scalar_lea.hbm %s2839_s9, 512  ;;  %s2164_s27 = scalar_lea.hbm %s2974_s30, 1024 }
 0x23e   : > { %p2161_p0 = scmp.ne.s32.totalorder %s2839_s9, %s2160_s4  ;;  %p2165_p13 = scmp.lt.u32.totalorder %s2839_s9, %s2974_s30 }
 0x23f   : > { %p2166_p12 = scmp.lt.u32.totalorder %s2164_s27, %s2160_s4  ;;  %p2168_p1 = scmp.lt.u32.totalorder %s2160_s4, %s2839_s9 }
 0x240   : > { %p2162_p11 = pnand %p2161_p0, %p2972_p5 }
 0x241   : > { %p2167_p8 = por %p2166_p12, %p2165_p13 }
 0x242   : > { %p2163_p7 = pneg %p2162_p11 }
 0x243   : > { %p2169_p9 = por %p2168_p1, %p2167_p8 }
 0x245   : > { %p2170_p3 = pnand %p2169_p9, %p2163_p7 }
 0x247   : > { %2173 = shalt.err (!%p2170_p3)
}
 0x248   : > { %1697 = dma.vmem_to_hbm [thread:$0]  (%p2972_p5), %s1104_s13, 512, %s2839_s9, %s1075_s25  }
 0x249 PF: > { %s2975_s14 = sld [smem:[#allocation17_spill]]  ;;  %p1718_p6 = scmp.ge.s32.totalorder %s2304_s28, 2 }
 0x24a   : > { %p2976_p4 = scmp.ne.s32.totalorder %s2959_s10, 0 }
 0x24c   : > { %p1711_p2 = pnand %p1718_p6, %p2976_p4 }
 0x24f   : > { %s1115_s24 = sand.u32 1, %s2975_s14  }
 0x250   : > { %s1116_s8 = scalar_lea.sflag [#allocation5], %s1115_s24 }
 0x251   : > { %2243 = dma.done.wait (!%p1711_p2), %s1116_s8, 512  }
 0x252   : > { %2245 = vsyncadd (!%p1711_p2), %s1116_s8, 4294966784  ;;  %s1125_s6 = scalar_lea.sflag [#allocation11], %s1115_s24 }
 0x253   : > { %2247 = dma.done.wait (!%p1711_p2), %s1125_s6, 512  }
 0x254   : > { %2249 = vsyncadd (!%p1711_p2), %s1125_s6, 4294966784  ;;  %s27_s28 = sadd.s32 1, %s2304_s28   ;;  %s2978_s25 = sld [smem:[#allocation20_spill]] }
 0x255   : > { %p2865_p10 = scmp.ge.s32.totalorder %s27_s28, 6   ;;  %s2979_s10 = sld [smem:[#allocation21_spill]] }
 0x256   : > { %s2980_s27 = sld [smem:[#allocation22_spill]]  ;;  %s2981_s15 = smov %s2256_s16 }
 0x257   : > { %s2982_s16 = smov %s2260_s17  ;;  %s2983_s17 = smov %s2578_s11 }
 0x258   : > { %s2984_s18 = smov %s2268_s19  ;;  %s2985_s19 = smov %s2272_s20 }
 0x259   : > { %s2986_s20 = smov %s2446_s29  ;;  %s2987_s21 = smov %s2280_s22 }
 0x25a   : > { %s2988_s22 = smov %s2284_s23  ;;  %s2989_s23 = smov %s2509_s5 }
 0x25b   : > { %s2990_s24 = smov %s2296_s26  ;;  %s2991_s26 = smov %s2979_s10 }
 0x25c   :  { %26 = sbr.rel (!%p2865_p10) target bundleno = 20 (0x14), region = 126 }
 0x263   :  { %1130 = vsyncpa [#allocation4], 1 }
 0x264   :  { %1132 = vsyncpa [#allocation4 + $0x1], 1 }
 0x265   :  { %1133 = vsyncpa [#allocation7], 1 }
 0x266   :  { %1135 = vsyncpa [#allocation7 + $0x1], 1 }
 0x267   :  { %1136 = vsyncpa [#allocation5], 1 }
 0x268   :  { %1138 = vsyncpa [#allocation5 + $0x1], 1 }
 0x269   :  { %1139 = vsyncpa [#allocation11], 1 }
 0x26a   :  { %1141 = vsyncpa [#allocation11 + $0x1], 1 }

</bundles_post_ra>
